<compile_context>
chip_gen: v5e
topology: v5e:2x2
jax: 0.10.0
libtpu: 0.0.40
codegen_flags: <defaults>
</compile_context>

<pallas_src>
from functools import partial

import jax
import jax.numpy as jnp
from jax.experimental import pallas as pl
from jax.experimental.pallas import tpu as pltpu

_LANE = 128


def _round_up(x, m):
    return ((x + m - 1) // m) * m


# ----------------------------- Fused Pallas kernel ----------------------------

def _make_fused_kernel(num_hermitian):
    """1 input layer + `num_hermitian` hermitian hidden layers + real-part linear head."""

    def kernel(*refs):
        # refs = (a, x, w0, b0, [w, b] * num_hermitian, w_out, b_out, o)
        a_ref, x_ref, w0_ref, b0_ref = refs[:4]
        o_ref = refs[-1]
        mid = refs[4:-1]
        layer_refs = mid[:2 * num_hermitian]
        wout_ref = mid[2 * num_hermitian]
        bout_ref = mid[2 * num_hermitian + 1]

        a = a_ref[...]                                   # [NP, NP] bf16, loaded once

        # ---- Layer 0 (input imaginary part is zero), reassociated ----------
        #   y0 = relu( (A @ x) @ [wr0|wi0]  +  rowsum(A) * [br0|bi0] )
        ax = jnp.dot(a, x_ref[...], preferred_element_type=jnp.float32)          # [NP, FP]
        rowsum = jnp.sum(a.astype(jnp.float32), axis=1, keepdims=True)           # [NP, 1]
        h = jnp.dot(ax.astype(jnp.bfloat16), w0_ref[...],
                    preferred_element_type=jnp.float32)                          # [NP, HP]
        y = jnp.maximum(h + rowsum * b0_ref[...], 0.0)   # split complex ReLU on [yr | yi]

        # ---- Hermitian-variant layers: packed complex block matmul ----------
        #   [hr|hi] = [xr|xi] @ [[wr, wi], [-wi, wr]] + [br|bi]
        #   [yr|yi] = A_hat @ [hr|hi]
        for l in range(num_hermitian):
            w = layer_refs[2 * l][...]
            b = layer_refs[2 * l + 1][...]
            h = jnp.dot(y.astype(jnp.bfloat16), w,
                        preferred_element_type=jnp.float32) + b
            y = jnp.dot(a, h.astype(jnp.bfloat16),
                        preferred_element_type=jnp.float32)
            y = jnp.maximum(y, 0.0)
            # TODO(synk): PyTorch applies Dropout on real/imag between layers; identity at
            # inference so omitted.

        # ---- Output head on the real half (wout rows for the imag half are zero);
        # padded to 128 lanes so the store is a full-width unmasked vst.
        o_ref[...] = jnp.dot(y.astype(jnp.bfloat16), wout_ref[...],
                             preferred_element_type=jnp.float32) + bout_ref[...]

    return kernel


# ----------------------------- One-time packing (hoisted out of forward) ------

def pack_weights(params):
    """Pack, pad and bf16-cast every weight ONCE.  Nothing here runs per forward call."""
    conv = params["conv"]
    wr0, wi0, br0, bi0 = conv[0]
    fin, hidden = wr0.shape
    out_w, out_b = params["out_w"], params["out_b"]
    out_dim = out_w.shape[1]

    fp = _round_up(fin, _LANE)               # padded input-feature width
    hp = _round_up(2 * hidden, _LANE)        # padded packed-complex hidden width [xr | xi]
    op = _round_up(out_dim, _LANE)           # padded head output width

    # Layer 0 (real input => only the real row-block is needed): [Fin, 2H] -> [FP, HP]
    w0 = jnp.concatenate([wr0, wi0], axis=1)
    w0 = jnp.pad(w0, ((0, fp - fin), (0, hp - 2 * hidden))).astype(jnp.bfloat16)
    b0 = jnp.pad(jnp.concatenate([br0, bi0], axis=1), ((0, 0), (0, hp - 2 * hidden)))

    # Hermitian layers: complex block form [[wr, wi], [-wi, wr]]: [2H, 2H] -> [HP, HP]
    layer_ws = []
    for (wr, wi, br, bi) in conv[1:]:
        top = jnp.concatenate([wr, wi], axis=1)
        bot = jnp.concatenate([-wi, wr], axis=1)
        w = jnp.concatenate([top, bot], axis=0)
        w = jnp.pad(w, ((0, hp - 2 * hidden), (0, hp - 2 * hidden))).astype(jnp.bfloat16)
        b = jnp.pad(jnp.concatenate([br, bi], axis=1), ((0, 0), (0, hp - 2 * hidden)))
        layer_ws += [w, b]

    # Head acts on the real half only (rows H..HP-1 zero); lanes padded to a multiple of 128.
    w_out = jnp.pad(out_w, ((0, hp - hidden), (0, op - out_dim))).astype(jnp.bfloat16)
    b_out = jnp.pad(out_b, ((0, 0), (0, op - out_dim)))

    packed = tuple([w0, b0] + layer_ws + [w_out, b_out])
    meta = dict(num_hermitian=len(conv) - 1, fin=fin, hidden=hidden,
                out_dim=out_dim, fp=fp, hp=hp, op=op)
    return packed, meta


def prepare_graph(a_hat, x_real, fp):
    """Pad node / feature dims to multiples of 128 and cast to bf16 ONCE per graph."""
    n = a_hat.shape[0]
    np_ = _round_up(n, _LANE)
    a_pad = jnp.pad(a_hat, ((0, np_ - n), (0, np_ - n))).astype(jnp.bfloat16)
    x_pad = jnp.pad(x_real, ((0, np_ - n), (0, fp - x_real.shape[1]))).astype(jnp.bfloat16)
    return a_pad, x_pad


# ----------------------------- Jitted forward: ONLY the fused kernel ----------

@partial(jax.jit, static_argnums=(0, 1, 2))
def complex_gcn_forward(num_hermitian, n, out_dim, a_pad, x_pad, *packed):
    np_ = a_pad.shape[0]
    fp = x_pad.shape[1]
    hp = packed[0].shape[1]
    op = packed[-1].shape[1]

    flops = (2 * np_ * np_ * fp                      # A @ x
             + 2 * np_ * fp * hp                     # (A x) @ W0
             + num_hermitian * (2 * np_ * hp * hp + 2 * np_ * np_ * hp)
             + 2 * np_ * hp * op)                    # head
    bytes_accessed = (sum(int(v.size) * v.dtype.itemsize for v in (a_pad, x_pad) + packed)
                      + np_ * op * 4)

    inputs = (a_pad, x_pad) + packed
    out_padded = pl.pallas_call(
        _make_fused_kernel(num_hermitian),
        in_specs=[pl.BlockSpec(memory_space=pltpu.MemorySpace.VMEM) for _ in inputs],
        out_specs=pl.BlockSpec(memory_space=pltpu.MemorySpace.VMEM),
        out_shape=jax.ShapeDtypeStruct((np_, op), jnp.float32),
        cost_estimate=pl.CostEstimate(flops=flops, transcendentals=0,
                                      bytes_accessed=bytes_accessed),
    )(*inputs)

    return out_padded[:n, :out_dim]


# ----------------------------- Params / graph construction --------------------

def glorot(key, shape):
    fan_in, fan_out = shape
    lim = jnp.sqrt(6.0 / (fan_in + fan_out))
    return jax.random.uniform(key, shape, jnp.float32, -lim, lim)


def init_params(key, input_dim, hidden_dim, output_dim, num_layers):
    """conv_layers = [Unitary(in,hid)] + num_layers * [Unitary(hid,hid, hermitian)];
       output_layer = Linear(hid, out)."""
    params = {"conv": [], "out_w": None, "out_b": None}
    dims = [(input_dim, hidden_dim)] + [(hidden_dim, hidden_dim)] * num_layers
    keys = jax.random.split(key, 4 * len(dims) + 2)
    k = 0
    for (fi, fo) in dims:
        wr = glorot(keys[k], (fi, fo)); k += 1
        wi = glorot(keys[k], (fi, fo)); k += 1
        br = 0.01 * jax.random.normal(keys[k], (1, fo), jnp.float32); k += 1
        bi = 0.01 * jax.random.normal(keys[k], (1, fo), jnp.float32); k += 1
        params["conv"].append((wr, wi, br, bi))
    params["out_w"] = glorot(keys[k], (hidden_dim, output_dim)); k += 1
    params["out_b"] = 0.01 * jax.random.normal(keys[k], (1, output_dim), jnp.float32)
    return params


def build_normalized_adjacency(key, n):
    adj = (jax.random.uniform(key, (n, n)) < 0.2).astype(jnp.float32)
    adj = jnp.maximum(adj, adj.T)                                    # symmetric
    adj = jnp.minimum(adj + jnp.eye(n, dtype=jnp.float32), 1.0)      # add self-loops
    deg = adj.sum(axis=1)
    d_inv_sqrt = 1.0 / jnp.sqrt(deg)
    return adj * d_inv_sqrt[:, None] * d_inv_sqrt[None, :]


# ----------------------------- Main -------------------------------------------

if __name__ == "__main__":
    N = 32            # number of graph nodes
    INPUT_DIM = 16
    HIDDEN_DIM = 32
    OUTPUT_DIM = 8
    NUM_LAYERS = 2    # args.num_layers -> total conv layers = 1 + NUM_LAYERS

    root = jax.random.PRNGKey(0)
    k_adj, k_x, k_params = jax.random.split(root, 3)

    a_hat = build_normalized_adjacency(k_adj, N)
    x = jax.random.normal(k_x, (N, INPUT_DIM), jnp.float32)
    params = init_params(k_params, INPUT_DIM, HIDDEN_DIM, OUTPUT_DIM, NUM_LAYERS)

    # One-time packing / padding: hoisted out of the per-call jitted forward.
    packed, meta = pack_weights(params)
    packed = jax.tree_util.tree_map(jax.block_until_ready, packed)
    a_pad, x_pad = prepare_graph(a_hat, x, meta["fp"])

    out = complex_gcn_forward(meta["num_hermitian"], N, meta["out_dim"],
                              a_pad, x_pad, *packed)
    out = jax.block_until_ready(out)

    assert out.shape == (N, OUTPUT_DIM)
    assert bool(jnp.all(jnp.isfinite(out)))
    print("KERNEL_OK")
</pallas_src>

<mosaic_0001>
module attributes {stable_mosaic.version = 11 : i64} {
  func.func @kernel(%arg0: memref<128x128xbf16, #tpu.memory_space<vmem>>, %arg1: memref<128x128xbf16, #tpu.memory_space<vmem>>, %arg2: memref<128x128xbf16, #tpu.memory_space<vmem>>, %arg3: memref<1x128xf32, #tpu.memory_space<vmem>>, %arg4: memref<128x128xbf16, #tpu.memory_space<vmem>>, %arg5: memref<1x128xf32, #tpu.memory_space<vmem>>, %arg6: memref<128x128xbf16, #tpu.memory_space<vmem>>, %arg7: memref<1x128xf32, #tpu.memory_space<vmem>>, %arg8: memref<128x128xbf16, #tpu.memory_space<vmem>>, %arg9: memref<1x128xf32, #tpu.memory_space<vmem>>, %arg10: memref<128x128xf32, #tpu.memory_space<vmem>>) attributes {dimension_semantics = [], scalar_prefetch = 0 : i64, scratch_operands = 0 : i64, tpu.core_type = #tpu.core_type<tc>} {
    %c0 = arith.constant 0 : index
    %c0_0 = arith.constant 0 : index
    %0 = vector.load %arg0[%c0, %c0_0] : memref<128x128xbf16, #tpu.memory_space<vmem>>, vector<128x128xbf16>
    %c0_1 = arith.constant 0 : index
    %c0_2 = arith.constant 0 : index
    %1 = vector.load %arg1[%c0_1, %c0_2] : memref<128x128xbf16, #tpu.memory_space<vmem>>, vector<128x128xbf16>
    %cst = arith.constant dense<0.000000e+00> : vector<128x128xf32>
    %2 = tpu.matmul %0, %1, %cst {dimension_numbers = #tpu.dot_dimension_numbers<[1], [0], [0], [1], [0, 0, 1, 1], [], []>} : vector<128x128xbf16>, vector<128x128xbf16>, vector<128x128xf32> -> vector<128x128xf32>
    %3 = arith.extf %0 : vector<128x128xbf16> to vector<128x128xf32>
    %cst_3 = arith.constant dense<0.000000e+00> : vector<128xf32>
    %4 = vector.multi_reduction <add>, %3, %cst_3 [1] : vector<128x128xf32> to vector<128xf32>
    %5 = vector.shape_cast %4 : vector<128xf32> to vector<128x1xf32>
    %6 = arith.truncf %2 : vector<128x128xf32> to vector<128x128xbf16>
    %c0_4 = arith.constant 0 : index
    %c0_5 = arith.constant 0 : index
    %7 = vector.load %arg2[%c0_4, %c0_5] : memref<128x128xbf16, #tpu.memory_space<vmem>>, vector<128x128xbf16>
    %cst_6 = arith.constant dense<0.000000e+00> : vector<128x128xf32>
    %8 = tpu.matmul %6, %7, %cst_6 {dimension_numbers = #tpu.dot_dimension_numbers<[1], [0], [0], [1], [0, 0, 1, 1], [], []>} : vector<128x128xbf16>, vector<128x128xbf16>, vector<128x128xf32> -> vector<128x128xf32>
    %c0_7 = arith.constant 0 : index
    %c0_8 = arith.constant 0 : index
    %9 = vector.load %arg3[%c0_7, %c0_8] : memref<1x128xf32, #tpu.memory_space<vmem>>, vector<1x128xf32>
    %10 = vector.broadcast %5 : vector<128x1xf32> to vector<128x128xf32>
    %11 = vector.broadcast %9 : vector<1x128xf32> to vector<128x128xf32>
    %12 = arith.mulf %10, %11 : vector<128x128xf32>
    %13 = arith.addf %8, %12 : vector<128x128xf32>
    %cst_9 = arith.constant 0.000000e+00 : f32
    %14 = vector.broadcast %cst_9 : f32 to vector<128x128xf32>
    %15 = arith.maximumf %13, %14 : vector<128x128xf32>
    %c0_10 = arith.constant 0 : index
    %c0_11 = arith.constant 0 : index
    %16 = vector.load %arg4[%c0_10, %c0_11] : memref<128x128xbf16, #tpu.memory_space<vmem>>, vector<128x128xbf16>
    %c0_12 = arith.constant 0 : index
    %c0_13 = arith.constant 0 : index
    %17 = vector.load %arg5[%c0_12, %c0_13] : memref<1x128xf32, #tpu.memory_space<vmem>>, vector<1x128xf32>
    %18 = arith.truncf %15 : vector<128x128xf32> to vector<128x128xbf16>
    %cst_14 = arith.constant dense<0.000000e+00> : vector<128x128xf32>
    %19 = tpu.matmul %18, %16, %cst_14 {dimension_numbers = #tpu.dot_dimension_numbers<[1], [0], [0], [1], [0, 0, 1, 1], [], []>} : vector<128x128xbf16>, vector<128x128xbf16>, vector<128x128xf32> -> vector<128x128xf32>
    %20 = vector.broadcast %17 : vector<1x128xf32> to vector<128x128xf32>
    %21 = arith.addf %19, %20 : vector<128x128xf32>
    %22 = arith.truncf %21 : vector<128x128xf32> to vector<128x128xbf16>
    %cst_15 = arith.constant dense<0.000000e+00> : vector<128x128xf32>
    %23 = tpu.matmul %0, %22, %cst_15 {dimension_numbers = #tpu.dot_dimension_numbers<[1], [0], [0], [1], [0, 0, 1, 1], [], []>} : vector<128x128xbf16>, vector<128x128xbf16>, vector<128x128xf32> -> vector<128x128xf32>
    %cst_16 = arith.constant 0.000000e+00 : f32
    %24 = vector.broadcast %cst_16 : f32 to vector<128x128xf32>
    %25 = arith.maximumf %23, %24 : vector<128x128xf32>
    %c0_17 = arith.constant 0 : index
    %c0_18 = arith.constant 0 : index
    %26 = vector.load %arg6[%c0_17, %c0_18] : memref<128x128xbf16, #tpu.memory_space<vmem>>, vector<128x128xbf16>
    %c0_19 = arith.constant 0 : index
    %c0_20 = arith.constant 0 : index
    %27 = vector.load %arg7[%c0_19, %c0_20] : memref<1x128xf32, #tpu.memory_space<vmem>>, vector<1x128xf32>
    %28 = arith.truncf %25 : vector<128x128xf32> to vector<128x128xbf16>
    %cst_21 = arith.constant dense<0.000000e+00> : vector<128x128xf32>
    %29 = tpu.matmul %28, %26, %cst_21 {dimension_numbers = #tpu.dot_dimension_numbers<[1], [0], [0], [1], [0, 0, 1, 1], [], []>} : vector<128x128xbf16>, vector<128x128xbf16>, vector<128x128xf32> -> vector<128x128xf32>
    %30 = vector.broadcast %27 : vector<1x128xf32> to vector<128x128xf32>
    %31 = arith.addf %29, %30 : vector<128x128xf32>
    %32 = arith.truncf %31 : vector<128x128xf32> to vector<128x128xbf16>
    %cst_22 = arith.constant dense<0.000000e+00> : vector<128x128xf32>
    %33 = tpu.matmul %0, %32, %cst_22 {dimension_numbers = #tpu.dot_dimension_numbers<[1], [0], [0], [1], [0, 0, 1, 1], [], []>} : vector<128x128xbf16>, vector<128x128xbf16>, vector<128x128xf32> -> vector<128x128xf32>
    %cst_23 = arith.constant 0.000000e+00 : f32
    %34 = vector.broadcast %cst_23 : f32 to vector<128x128xf32>
    %35 = arith.maximumf %33, %34 : vector<128x128xf32>
    %36 = arith.truncf %35 : vector<128x128xf32> to vector<128x128xbf16>
    %c0_24 = arith.constant 0 : index
    %c0_25 = arith.constant 0 : index
    %37 = vector.load %arg8[%c0_24, %c0_25] : memref<128x128xbf16, #tpu.memory_space<vmem>>, vector<128x128xbf16>
    %cst_26 = arith.constant dense<0.000000e+00> : vector<128x128xf32>
    %38 = tpu.matmul %36, %37, %cst_26 {dimension_numbers = #tpu.dot_dimension_numbers<[1], [0], [0], [1], [0, 0, 1, 1], [], []>} : vector<128x128xbf16>, vector<128x128xbf16>, vector<128x128xf32> -> vector<128x128xf32>
    %c0_27 = arith.constant 0 : index
    %c0_28 = arith.constant 0 : index
    %39 = vector.load %arg9[%c0_27, %c0_28] : memref<1x128xf32, #tpu.memory_space<vmem>>, vector<1x128xf32>
    %40 = vector.broadcast %39 : vector<1x128xf32> to vector<128x128xf32>
    %41 = arith.addf %38, %40 : vector<128x128xf32>
    %c0_29 = arith.constant 0 : index
    %c0_30 = arith.constant 0 : index
    %42 = vector.load %arg10[%c0_29, %c0_30] : memref<128x128xf32, #tpu.memory_space<vmem>>, vector<128x128xf32>
    tpu.vector_store %arg10[%c0_29, %c0_30], %41 {strides = array<i32>} : memref<128x128xf32, #tpu.memory_space<vmem>>, vector<128x128xf32>,
    return
  }
}

</mosaic_0001>

<bundles_post_ra>
// kernel: complex_gcn_forward.1
= control target key start
LH: loop header
LB: loop body
LE: loop exit
PB: predicated region body
PF: predicated region fallthrough
CT: control target
= control target key end

     0   :  { %15 = vsyncpa [#allocation3], 0  ;;  %s1701_s0 = inlined_call_operand.hbm [shape: bf16[128,128], index: 0, kind: input, shape index: {}]   ;;  %s1702_s1 = inlined_call_operand.hbm [shape: bf16[128,128], index: 1, kind: input, shape index: {}]   ;;  %s1703_s2 = inlined_call_operand.hbm [shape: bf16[128,128], index: 2, kind: input, shape index: {}]   ;;  %s1704_s3 = inlined_call_operand.vmem [shape: f32[1,128], index: 3, kind: input, shape index: {}]   ;;  %s1705_s4 = inlined_call_operand.hbm [shape: bf16[128,128], index: 4, kind: input, shape index: {}]   ;;  %s1706_s5 = inlined_call_operand.vmem [shape: f32[1,128], index: 5, kind: input, shape index: {}]   ;;  %s1707_s6 = inlined_call_operand.hbm [shape: bf16[128,128], index: 6, kind: input, shape index: {}]   ;;  %s1708_s7 = inlined_call_operand.vmem [shape: f32[1,128], index: 7, kind: input, shape index: {}]   ;;  %s1709_s8 = inlined_call_operand.hbm [shape: bf16[128,128], index: 8, kind: input, shape index: {}]   ;;  %s1710_s9 = inlined_call_operand.vmem [shape: f32[1,128], index: 9, kind: input, shape index: {}]   ;;  %s1711_s10 = inlined_call_operand.vmem [shape: f32[128,128], index: 10, kind: output, shape index: {}]  }
   0x1   :  { %16 = vsyncpa [#allocation5], 0 }
   0x2   :  { %17 = vsyncpa [#allocation8], 0 }
   0x3   :  { %18 = vsyncpa [#allocation11], 0  ;;  %s36_s15 = sshll.u32 %s1702_s1, 4  ;;  %s1484_s16 = smov [#allocation4]   ;;  %s37_s15 = int_to_ptr.hbm [resolvable:$true] %s36_s15 }
   0x4   :  { %s38_s17 = sshll.u32 %s1484_s16, 4  ;;  %s64_s20 = sshll.u32 %s1705_s4, 4  ;;  %s39_s17 = int_to_ptr.vmem [resolvable:$true] %s38_s17  ;;  %s65_s20 = int_to_ptr.hbm [resolvable:$true] %s64_s20 }
   0x5   :  { %s1485_s21 = smov 64   ;;  %s1486_s22 = smov 4  }
   0x6   :  { %44 = dma.hbm_to_vmem [thread:$0]  %s37_s15, 1024, %s39_s17, [#allocation5], %s1485_s21, %s1485_s21, %s1486_s22  }
   0x7   :  { %s1487_s23 = smov [#allocation7]   ;;  %s23_s1 = sshll.u32 %s1701_s0, 4  ;;  %s24_s1 = int_to_ptr.hbm [resolvable:$true] %s23_s1 }
   0x8   :  { %s66_s24 = sshll.u32 %s1487_s23, 4  ;;  %s49_s28 = sshll.u32 %s1703_s2, 4  ;;  %s67_s24 = int_to_ptr.vmem [resolvable:$true] %s66_s24  ;;  %s50_s28 = int_to_ptr.hbm [resolvable:$true] %s49_s28 }
   0x9   :  { %72 = dma.hbm_to_vmem [thread:$0]  %s65_s20, 1024, %s67_s24, [#allocation8], %s1485_s21, %s1485_s21, %s1486_s22  }
   0xa   :  { %s1488_s29 = smov [#allocation2]   ;;  %s1489_s11 = smov [#allocation6]  }
   0xb   :  { %s25_s30 = sshll.u32 %s1488_s29, 4  ;;  %s51_s0 = sshll.u32 %s1489_s11, 4  ;;  %s26_s30 = int_to_ptr.vmem [resolvable:$true] %s25_s30  ;;  %s52_s0 = int_to_ptr.vmem [resolvable:$true] %s51_s0 }
   0xc   :  { %31 = dma.hbm_to_vmem [thread:$0]  %s24_s1, 1024, %s26_s30, [#allocation3], %s1485_s21, %s1485_s21, %s1486_s22  }
   0xd   :  { %s79_s14 = sshll.u32 %s1707_s6, 4  ;;  %s94_s16 = sshll.u32 %s1709_s8, 4  ;;  %s80_s14 = int_to_ptr.hbm [resolvable:$true] %s79_s14  ;;  %s95_s16 = int_to_ptr.hbm [resolvable:$true] %s94_s16 }
   0xe   :  { %57 = dma.hbm_to_vmem [thread:$0]  %s50_s28, 1024, %s52_s0, [#allocation5], %s1485_s21, %s1485_s21, %s1486_s22  }
   0xf   :  { %s1490_s17 = smov [#allocation9]   ;;  %s1491_s19 = smov [#allocation10]  }
  0x10   :  { %s81_s18 = sshll.u32 %s1490_s17, 4  ;;  %s96_s6 = sshll.u32 %s1491_s19, 4  ;;  %s82_s18 = int_to_ptr.vmem [resolvable:$true] %s81_s18  ;;  %s97_s6 = int_to_ptr.vmem [resolvable:$true] %s96_s6 }
  0x11   :  { %87 = dma.hbm_to_vmem [thread:$0]  %s80_s14, 1024, %s82_s18, [#allocation8], %s1485_s21, %s1485_s21, %s1486_s22  }
  0x12   :  { %102 = dma.hbm_to_vmem [thread:$0]  %s95_s16, 1024, %s97_s6, [#allocation11], %s1485_s21, %s1485_s21, %s1486_s22  }
  0x13   :  { %1476 = dma.done.wait [#allocation3], 1024  }
  0x14   :  { %1477 = vsyncadd [#allocation3], 4294966272 }
  0x15   :  { %1478 = dma.done.wait [#allocation5], 2048  }
  0x16   :  { %1479 = vsyncadd [#allocation5], 4294965248 }
  0x17   :  { %1480 = dma.done.wait [#allocation8], 2048  }
  0x18   :  { %1481 = vsyncadd [#allocation8], 4294965248 }
  0x19   :  { %1482 = dma.done.wait [#allocation11], 1024  }
  0x1a   :  { %1483 = vsyncadd [#allocation11], 4294966272  ;;  %v1263_v0 = vld [vmem:[#allocation4 + $0x38] sm:$0xff]  ;;  %v1262_v1 = vld [vmem:[#allocation4 + $0x30] sm:$0xff] }
  0x1b   :  { %1296 = vmatpush.bf16.msra.mxu3 %v1263_v0  ;;  %257 = vmatpush.bf16.msra.mxu0 %v1263_v0  ;;  %v1261_v2 = vld [vmem:[#allocation4 + $0x28] sm:$0xff]  ;;  %v1260_v3 = vld [vmem:[#allocation4 + $0x20] sm:$0xff]  ;;  %v1259_v4 = vld [vmem:[#allocation4 + $0x18] sm:$0xff] }
  0x1c   :  { %v1258_v5 = vld [vmem:[#allocation4 + $0x10] sm:$0xff]  ;;  %v1257_v6 = vld [vmem:[#allocation4 + $0x8] sm:$0xff]  ;;  %v1256_v7 = vld [vmem:[#allocation4] sm:$0xff] }
  0x1d   :  { %v1583_v8 = vld [vmem:[#allocation2 + $0x10] sm:$0xff]  ;;  %v1586_v9 = vld [vmem:[#allocation2 + $0x18] sm:$0xff]  ;;  %v1589_v10 = vld [vmem:[#allocation2 + $0x20] sm:$0xff] }
  0x1e   :  { %v1592_v11 = vld [vmem:[#allocation2] sm:$0xff]  ;;  %v1595_v12 = vld [vmem:[#allocation2 + $0x28] sm:$0xff]  ;;  %v1271_v14 = vld [vmem:[#allocation6 + $0x38] sm:$0xff] }
  0x1f   :  { %1297 = vmatpush.bf16.msra.mxu3 %v1262_v1  ;;  %258 = vmatpush.bf16.msra.mxu0 %v1262_v1  ;;  %v1598_v13 = vld [vmem:[#allocation2 + $0x8] sm:$0xff]  ;;  %v1270_v15 = vld [vmem:[#allocation6 + $0x30] sm:$0xff]  ;;  %v1268_v17 = vld [vmem:[#allocation6 + $0x20] sm:$0xff] }
  0x20   :  { %1304 = vmatpush.bf16.msra.mxu1 %v1271_v14  ;;  %v1269_v16 = vld [vmem:[#allocation6 + $0x28] sm:$0xff]  ;;  %v1601_v18 = vld [vmem:[#allocation2 + $0x30] sm:$0xff]  ;;  %v1267_v19 = vld [vmem:[#allocation6 + $0x18] sm:$0xff] }
  0x21   :  { %v1604_v20 = vld [vmem:[#allocation2 + $0x38] sm:$0xff]  ;;  %v1266_v21 = vld [vmem:[#allocation6 + $0x10] sm:$0xff]  ;;  %v1265_v22 = vld [vmem:[#allocation6 + $0x8] sm:$0xff] }
  0x22   :  { %v1264_v23 = vld [vmem:[#allocation6] sm:$0xff]  ;;  %v133_v24 = vld [vmem:[#allocation2 + $0x10] sm:$0xff]   ;;  %v135_v28 = vld [vmem:[#allocation2 + $0x18] sm:$0xff]  }
  0x23   :  { %1298 = vmatpush.bf16.msra.mxu3 %v1261_v2  ;;  %259 = vmatpush.bf16.msra.mxu0 %v1261_v2  ;;  %v310_v25 = vunpack.c.l.bf16 %v133_v24  ;;  %v311_v26 = vunpack.c.h.bf16 %v133_v24  ;;  %v312_v29 = vunpack.c.l.bf16 %v135_v28  ;;  %v313_v32 = vunpack.c.h.bf16 %v135_v28  ;;  %v137_v34 = vld [vmem:[#allocation2 + $0x20] sm:$0xff]   ;;  %v139_v40 = vld [vmem:[#allocation2 + $0x28] sm:$0xff]   ;;  %v141_v49 = vld [vmem:[#allocation2 + $0x30] sm:$0xff]  }
  0x24   :  { %1305 = vmatpush.bf16.msra.mxu1 %v1270_v15  ;;  %v314_v35 = vunpack.c.l.bf16 %v137_v34  ;;  %v315_v38 = vunpack.c.h.bf16 %v137_v34  ;;  %v316_v41 = vunpack.c.l.bf16 %v139_v40  ;;  %v317_v45 = vunpack.c.h.bf16 %v139_v40  ;;  %v143_v52 = vld [vmem:[#allocation2 + $0x38] sm:$0xff]   ;;  %v130_v58 = vld [vmem:[#allocation2 + $0x4] sm:$0xff]   ;;  %v129_v59 = vld [vmem:[#allocation2] sm:$0xf] }
  0x25   :  { %330 = vadd.xlane.f32.xlu0 %v310_v25  ;;  %334 = vadd.xlane.f32.xlu1 %v312_v29  ;;  %v318_v50 = vunpack.c.l.bf16 %v141_v49  ;;  %v320_v53 = vunpack.c.l.bf16 %v143_v52  ;;  %v319_v54 = vunpack.c.h.bf16 %v141_v49  ;;  %v321_v60 = vunpack.c.h.bf16 %v143_v52  ;;  %v1279_v62 = vld [vmem:[#allocation7 + $0x38] sm:$0xff]  ;;  %v1278_v1 = vld [vmem:[#allocation7 + $0x30] sm:$0xff]  ;;  %v1272_v24 = vld [vmem:[#allocation7] sm:$0xff] }
  0x26   :  { %338 = vadd.xlane.f32.xlu2 %v314_v35  ;;  %v307_v63 = vunpack.c.l.bf16 %v130_v58  ;;  %v306_v0 = vunpack.c.l.bf16 %v129_v59  ;;  %1312 = vmatpush.bf16.msra.mxu2 %v1279_v62 }
  0x27   :  { %1299 = vmatpush.bf16.msra.mxu3 %v1260_v3  ;;  %260 = vmatpush.bf16.msra.mxu0 %v1260_v3  ;;  %v308_v3 = vunpack.c.h.bf16 %v130_v58 }
  0x28   :  { %1306 = vmatpush.bf16.msra.mxu1 %v1269_v16 }
  0x2a   :  { %1313 = vmatpush.bf16.msra.mxu2 %v1278_v1 }
  0x2b   :  { %1300 = vmatpush.bf16.msra.mxu3 %v1259_v4  ;;  %261 = vmatpush.bf16.msra.mxu0 %v1259_v4  ;;  %v132_v4 = vld [vmem:[#allocation2 + $0xc] sm:$0xf] }
  0x2c   :  { %1307 = vmatpush.bf16.msra.mxu1 %v1268_v17 }
  0x2d   :  { %332 = vadd.xlane.f32.xlu0 %v311_v26  ;;  %336 = vadd.xlane.f32.xlu1 %v313_v32  ;;  %v1610_v26 = vld [vmem:[%s1704_s3] ss:$0 sm:$0xff] }
  0x2e   :  { %340 = vadd.xlane.f32.xlu2 %v315_v38 }
  0x2f   :  { %1301 = vmatpush.bf16.msra.mxu3 %v1258_v5  ;;  %262 = vmatpush.bf16.msra.mxu0 %v1258_v5  ;;  %v1277_v5 = vld [vmem:[#allocation7 + $0x28] sm:$0xff] }
  0x30   :  { %1308 = vmatpush.bf16.msra.mxu1 %v1267_v19  ;;  %1314 = vmatpush.bf16.msra.mxu2 %v1277_v5 }
  0x33   :  { %1302 = vmatpush.bf16.msra.mxu3 %v1257_v6  ;;  %263 = vmatpush.bf16.msra.mxu0 %v1257_v6  ;;  %v309_v6 = vunpack.c.l.bf16 %v132_v4 }
  0x34   :  { %1309 = vmatpush.bf16.msra.mxu1 %v1266_v21 }
  0x35   :  { %342 = vadd.xlane.f32.xlu0 %v316_v41  ;;  %344 = vadd.xlane.f32.xlu1 %v317_v45 }
  0x36   :  { %346 = vadd.xlane.f32.xlu2 %v318_v50 }
  0x37   :  { %1303 = vmatpush.bf16.msra.mxu3 %v1256_v7  ;;  %264 = vmatpush.bf16.msra.mxu0 %v1256_v7  ;;  %v1276_v7 = vld [vmem:[#allocation7 + $0x20] sm:$0xff] }
  0x38   :  { %1310 = vmatpush.bf16.msra.mxu1 %v1265_v22  ;;  %1315 = vmatpush.bf16.msra.mxu2 %v1276_v7 }
  0x3a   :  { %275 = vmatmul.bf16.vlgmr.msra.gmra.mxu3 %v1583_v8  ;;  %265 = vmatmul.bf16.vlgmr.msra.gmra.mxu0 %v1592_v11 }
  0x3b   :  { %446 = vmatpush.bf16.msrb.mxu0 %v1271_v14 }
  0x3c   :  { %1311 = vmatpush.bf16.msra.mxu1 %v1264_v23 }
  0x3d   :  { %350 = vadd.xlane.f32.xlu1 %v320_v53  ;;  %348 = vadd.xlane.f32.xlu0 %v319_v54 }
  0x3e   :  { %352 = vadd.xlane.f32.xlu2 %v321_v60 }
  0x3f   :  { %447 = vmatpush.bf16.msrb.mxu0 %v1270_v15 }
  0x43   :  { %448 = vmatpush.bf16.msrb.mxu0 %v1269_v16 }
  0x45   :  { %324 = vadd.xlane.f32.xlu1 %v307_v63  ;;  %322 = vadd.xlane.f32.xlu0 %v306_v0 }
  0x46   :  { %326 = vadd.xlane.f32.xlu2 %v308_v3 }
  0x47   :  { %449 = vmatpush.bf16.msrb.mxu0 %v1268_v17 }
  0x4a   :  { %280 = vmatmul.bf16.gmra.mxu3 %v1586_v9  ;;  %270 = vmatmul.bf16.gmra.mxu0 %v1598_v13 }
  0x4b   :  { %450 = vmatpush.bf16.msrb.mxu0 %v1267_v19 }
  0x4d   :  { %328 = vadd.xlane.f32.xlu0 %v309_v6 }
  0x4f   :  { %451 = vmatpush.bf16.msrb.mxu0 %v1266_v21  ;;  %v1275_v21 = vld [vmem:[#allocation7 + $0x18] sm:$0xff] }
  0x50   :  { %1316 = vmatpush.bf16.msra.mxu2 %v1275_v21 }
  0x53   :  { %452 = vmatpush.bf16.msrb.mxu0 %v1265_v22  ;;  %v1274_v22 = vld [vmem:[#allocation7 + $0x10] sm:$0xff] }
  0x54   :  { %1317 = vmatpush.bf16.msra.mxu2 %v1274_v22 }
  0x57   :  { %453 = vmatpush.bf16.msrb.mxu0 %v1264_v23  ;;  %v1273_v23 = vld [vmem:[#allocation7 + $0x8] sm:$0xff] }
  0x58   :  { %1318 = vmatpush.bf16.msra.mxu2 %v1273_v23 }
  0x5a   :  { %285 = vmatmul.bf16.gmra.mxu3 %v1589_v10 }
  0x5b   :  { %587 = vmatpush.bf16.msra.mxu0 %v1279_v62 }
  0x5c   :  { %1319 = vmatpush.bf16.msra.mxu2 %v1272_v24 }
  0x5f   :  { %588 = vmatpush.bf16.msra.mxu0 %v1278_v1 }
  0x63   :  { %589 = vmatpush.bf16.msra.mxu0 %v1277_v5 }
  0x67   :  { %590 = vmatpush.bf16.msra.mxu0 %v1276_v7 }
  0x6a   :  { %290 = vmatmul.bf16.gmra.mxu3 %v1595_v12 }
  0x6b   :  { %591 = vmatpush.bf16.msra.mxu0 %v1275_v21 }
  0x6f   :  { %592 = vmatpush.bf16.msra.mxu0 %v1274_v22 }
  0x73   :  { %593 = vmatpush.bf16.msra.mxu0 %v1273_v23 }
  0x77   :  { %594 = vmatpush.bf16.msra.mxu0 %v1272_v24 }
  0x7a   :  { %295 = vmatmul.bf16.gmra.mxu3 %v1601_v18 }
  0x8a   :  { %300 = vmatmul.bf16.gmra.mxu3 %v1604_v20 }
  0x98   :  { %v331_v25 = vpop.xlane.xlu0 %330 }
  0x99   :  { %v386_v29 = vmul.f32 %v1610_v26, %v331_v25 }
  0xa0   :  { %v333_v28 = vpop.xlane.xlu0 %332 }
  0xb7   :  { %v266_v42 = vpop.f32.mrf.mxu0 }
  0xbd   :  { %v276_v27 = vpop.f32.mrf.mxu3 }
  0xbf   :  { %v268_v46 = vpop.f32.mrf.mxu0 }
  0xc0   :  { %v354_v47 = vpack.c.bf16 %v268_v46, %v266_v42 }
  0xc2   :  { %454 = vmatmul.bf16.vlgmr.msrb.gmra.mxu0 %v354_v47 }
  0xc5   :  { %v278_v30 = vpop.f32.mrf.mxu3 }
  0xc6   :  { %v356_v31 = vpack.c.bf16 %v278_v30, %v276_v27  ;;  %v387_v30 = vmul.f32 %v1610_v26, %v333_v28 }
  0xc7   :  { %v271_v51 = vpop.f32.mrf.mxu0 }
  0xc8   :  { %464 = vmatmul.bf16.vlgmr.msra.gmra.mxu1 %v356_v31 }
  0xcd   :  { %v281_v33 = vpop.f32.mrf.mxu3 }
  0xcf   :  { %v273_v57 = vpop.f32.mrf.mxu0 }
  0xd0   :  { %v355_v61 = vpack.c.bf16 %v273_v57, %v271_v51 }
  0xd2   :  { %459 = vmatmul.bf16.gmra.mxu0 %v355_v61 }
  0xd5   :  { %v283_v36 = vpop.f32.mrf.mxu3 }
  0xd6   :  { %v357_v37 = vpack.c.bf16 %v283_v36, %v281_v33  ;;  %v335_v33 = vpop.xlane.xlu1 %334 }
  0xd7   :  { %v388_v40 = vmul.f32 %v1610_v26, %v335_v33 }
  0xd8   :  { %469 = vmatmul.bf16.gmra.mxu1 %v357_v37 }
  0xdd   :  { %v286_v39 = vpop.f32.mrf.mxu3 }
  0xe5   :  { %v288_v43 = vpop.f32.mrf.mxu3 }
  0xe6   :  { %v358_v44 = vpack.c.bf16 %v288_v43, %v286_v39  ;;  %v337_v39 = vpop.xlane.xlu1 %336 }
  0xe7   :  { %v389_v41 = vmul.f32 %v1610_v26, %v337_v39 }
  0xe8   :  { %474 = vmatmul.bf16.gmra.mxu1 %v358_v44  ;;  %v339_v44 = vpop.xlane.xlu2 %338 }
  0xe9   :  { %v390_v53 = vmul.f32 %v1610_v26, %v339_v44 }
  0xed   :  { %v291_v48 = vpop.f32.mrf.mxu3 }
  0xee   :  { %v345_v49 = vpop.xlane.xlu1 %344 }
  0xef   :  { %v393_v23 = vmul.f32 %v1610_v26, %v345_v49 }
  0xf0   :  { %v341_v52 = vpop.xlane.xlu2 %340 }
  0xf1   :  { %v391_v57 = vmul.f32 %v1610_v26, %v341_v52 }
  0xf5   :  { %v293_v55 = vpop.f32.mrf.mxu3 }
  0xf6   :  { %v359_v56 = vpack.c.bf16 %v293_v55, %v291_v48  ;;  %v343_v48 = vpop.xlane.xlu0 %342  ;;  %v351_v55 = vpop.xlane.xlu1 %350 }
  0xf8   :  { %479 = vmatmul.bf16.gmra.mxu1 %v359_v56  ;;  %v347_v63 = vpop.xlane.xlu2 %346 }
  0xfd   :  { %v296_v2 = vpop.f32.mrf.mxu3 }
  0xfe   :  { %v349_v56 = vpop.xlane.xlu0 %348  ;;  %v325_v1 = vpop.xlane.xlu1 %324 }
  0xff   :  { %v383_v4 = vmul.f32 %v1610_v26, %v325_v1 }
 0x100   :  { %v353_v21 = vpop.xlane.xlu2 %352 }
 0x101   :  { %v397_v52 = vmul.f32 %v1610_v26, %v353_v21 }
 0x105   :  { %v298_v14 = vpop.f32.mrf.mxu3 }
 0x106   :  { %v360_v15 = vpack.c.bf16 %v298_v14, %v296_v2  ;;  %v323_v2 = vpop.xlane.xlu0 %322 }
 0x107   :  { %v382_v5 = vmul.f32 %v1610_v26, %v323_v2 }
 0x108   :  { %484 = vmatmul.bf16.gmra.mxu1 %v360_v15 }
 0x10d   :  { %v301_v16 = vpop.f32.mrf.mxu3 }
 0x115   :  { %v303_v17 = vpop.f32.mrf.mxu3 }
 0x116   :  { %v361_v19 = vpack.c.bf16 %v303_v17, %v301_v16  ;;  %v392_v17 = vmul.f32 %v1610_v26, %v343_v48 }
 0x118   :  { %489 = vmatmul.bf16.gmra.mxu1 %v361_v19 }
 0x13f   :  { %v455_v54 = vpop.f32.mrf.mxu0 }
 0x140   :  { %v456_v6 = vadd.f32 %v455_v54, %v382_v5 }
 0x142   :  { %v495_v15 = vmax.f32 %v456_v6, 0.0 }
 0x145   :  { %v465_v27 = vpop.f32.mrf.mxu1 }
 0x146   :  { %v466_v31 = vadd.f32 %v465_v27, %v386_v29 }
 0x147   :  { %v457_v0 = vpop.f32.mrf.mxu0 }
 0x148   :  { %v499_v35 = vmax.f32 %v466_v31, 0.0  ;;  %v458_v7 = vadd.f32 %v457_v0, %v383_v4  ;;  %v329_v31 = vpop.xlane.xlu0 %328 }
 0x149   :  { %v385_v33 = vmul.f32 %v1610_v26, %v329_v31 }
 0x14a   :  { %v496_v16 = vmax.f32 %v458_v7, 0.0 }
 0x14c   :  { %v528_v19 = vpack.c.bf16 %v496_v16, %v495_v15 }
 0x14d   :  { %v467_v32 = vpop.f32.mrf.mxu1 }
 0x14e   :  { %v468_v34 = vadd.f32 %v467_v32, %v387_v30  ;;  %595 = vmatmul.bf16.vlgmr.msra.gmra.mxu0 %v528_v19  ;;  %v327_v30 = vpop.xlane.xlu2 %326 }
 0x14f   :  { %v460_v22 = vpop.f32.mrf.mxu0  ;;  %v384_v32 = vmul.f32 %v1610_v26, %v327_v30 }
 0x150   :  { %v500_v36 = vmax.f32 %v468_v34, 0.0 }
 0x152   :  { %v530_v37 = vpack.c.bf16 %v500_v36, %v499_v35  ;;  %v461_v36 = vadd.f32 %v460_v22, %v384_v32 }
 0x154   :  { %605 = vmatmul.bf16.vlgmr.msra.gmra.mxu2 %v530_v37  ;;  %v497_v39 = vmax.f32 %v461_v36, 0.0 }
 0x155   :  { %v470_v38 = vpop.f32.mrf.mxu1 }
 0x156   :  { %v471_v42 = vadd.f32 %v470_v38, %v388_v40 }
 0x157   :  { %v462_v34 = vpop.f32.mrf.mxu0 }
 0x158   :  { %v501_v46 = vmax.f32 %v471_v42, 0.0  ;;  %v463_v37 = vadd.f32 %v462_v34, %v385_v33  ;;  %v394_v42 = vmul.f32 %v1610_v26, %v347_v63 }
 0x15a   :  { %v498_v40 = vmax.f32 %v463_v37, 0.0 }
 0x15d   :  { %v472_v43 = vpop.f32.mrf.mxu1 }
 0x15e   :  { %v473_v45 = vadd.f32 %v472_v43, %v389_v41  ;;  %v529_v41 = vpack.c.bf16 %v498_v40, %v497_v39  ;;  %v395_v43 = vmul.f32 %v1610_v26, %v349_v56 }
 0x160   :  { %v502_v47 = vmax.f32 %v473_v45, 0.0  ;;  %600 = vmatmul.bf16.gmra.mxu0 %v529_v41 }
 0x162   :  { %v531_v50 = vpack.c.bf16 %v502_v47, %v501_v46 }
 0x164   :  { %610 = vmatmul.bf16.gmra.mxu2 %v531_v50 }
 0x165   :  { %v475_v51 = vpop.f32.mrf.mxu1 }
 0x166   :  { %v476_v58 = vadd.f32 %v475_v51, %v390_v53  ;;  %v396_v51 = vmul.f32 %v1610_v26, %v351_v55  ;;  %v1329_v26 = vld [vmem:[%s1706_s5] ss:$0 sm:$0xff] }
 0x168   :  { %v503_v61 = vmax.f32 %v476_v58, 0.0 }
 0x16d   :  { %v477_v59 = vpop.f32.mrf.mxu1 }
 0x16e   :  { %v478_v60 = vadd.f32 %v477_v59, %v391_v57 }
 0x170   :  { %v504_v62 = vmax.f32 %v478_v60, 0.0 }
 0x172   :  { %v532_v3 = vpack.c.bf16 %v504_v62, %v503_v61 }
 0x174   :  { %615 = vmatmul.bf16.gmra.mxu2 %v532_v3 }
 0x175   :  { %v480_v14 = vpop.f32.mrf.mxu1 }
 0x176   :  { %v481_v24 = vadd.f32 %v480_v14, %v392_v17 }
 0x178   :  { %v505_v28 = vmax.f32 %v481_v24, 0.0 }
 0x17d   :  { %v482_v25 = vpop.f32.mrf.mxu1 }
 0x17e   :  { %v483_v27 = vadd.f32 %v482_v25, %v393_v23 }
 0x180   :  { %v506_v29 = vmax.f32 %v483_v27, 0.0 }
 0x182   :  { %v533_v35 = vpack.c.bf16 %v506_v29, %v505_v28 }
 0x184   :  { %620 = vmatmul.bf16.gmra.mxu2 %v533_v35 }
 0x185   :  { %v485_v38 = vpop.f32.mrf.mxu1 }
 0x186   :  { %v486_v44 = vadd.f32 %v485_v38, %v394_v42 }
 0x188   :  { %v507_v47 = vmax.f32 %v486_v44, 0.0  ;;  %v1287_v44 = vld [vmem:[#allocation9 + $0x38] sm:$0xff] }
 0x189   :  { %785 = vmatpush.bf16.msrb.mxu0 %v1287_v44 }
 0x18d   :  { %v487_v45 = vpop.f32.mrf.mxu1 }
 0x18e   :  { %v488_v46 = vadd.f32 %v487_v45, %v395_v43  ;;  %v1286_v45 = vld [vmem:[#allocation9 + $0x30] sm:$0xff] }
 0x18f   :  { %786 = vmatpush.bf16.msrb.mxu0 %v1286_v45 }
 0x190   :  { %v508_v48 = vmax.f32 %v488_v46, 0.0  ;;  %v1285_v46 = vld [vmem:[#allocation9 + $0x28] sm:$0xff] }
 0x192   :  { %v534_v49 = vpack.c.bf16 %v508_v48, %v507_v47  ;;  %v1284_v47 = vld [vmem:[#allocation9 + $0x20] sm:$0xff]  ;;  %v1283_v48 = vld [vmem:[#allocation9 + $0x18] sm:$0xff] }
 0x193   :  { %787 = vmatpush.bf16.msrb.mxu0 %v1285_v46 }
 0x194   :  { %625 = vmatmul.bf16.gmra.mxu2 %v534_v49  ;;  %v1282_v49 = vld [vmem:[#allocation9 + $0x10] sm:$0xff] }
 0x195   :  { %v490_v50 = vpop.f32.mrf.mxu1 }
 0x196   :  { %v491_v53 = vadd.f32 %v490_v50, %v396_v51  ;;  %v1281_v50 = vld [vmem:[#allocation9 + $0x8] sm:$0xff]  ;;  %v1280_v51 = vld [vmem:[#allocation9] sm:$0xff] }
 0x197   :  { %788 = vmatpush.bf16.msrb.mxu0 %v1284_v47 }
 0x198   :  { %v509_v58 = vmax.f32 %v491_v53, 0.0 }
 0x19b   :  { %789 = vmatpush.bf16.msrb.mxu0 %v1283_v48 }
 0x19d   :  { %v492_v54 = vpop.f32.mrf.mxu1 }
 0x19e   :  { %v493_v57 = vadd.f32 %v492_v54, %v397_v52 }
 0x19f   :  { %790 = vmatpush.bf16.msrb.mxu0 %v1282_v49 }
 0x1a0   :  { %v510_v59 = vmax.f32 %v493_v57, 0.0 }
 0x1a2   :  { %v535_v60 = vpack.c.bf16 %v510_v59, %v509_v58 }
 0x1a3   :  { %791 = vmatpush.bf16.msrb.mxu0 %v1281_v50 }
 0x1a4   :  { %630 = vmatmul.bf16.gmra.mxu2 %v535_v60 }
 0x1a7   :  { %792 = vmatpush.bf16.msrb.mxu0 %v1280_v51 }
 0x1cb   :  { %v596_v55 = vpop.f32.mrf.mxu0 }
 0x1cc   :  { %v597_v40 = vadd.f32 %v1329_v26, %v596_v55 }
 0x1d3   :  { %v598_v7 = vpop.f32.mrf.mxu0 }
 0x1d4   :  { %v599_v41 = vadd.f32 %v1329_v26, %v598_v7 }
 0x1d6   :  { %v636_v43 = vpack.c.bf16 %v599_v41, %v597_v40 }
 0x1d7   :  { %v606_v56 = vpop.f32.mrf.mxu2 }
 0x1d8   :  { %v607_v36 = vadd.f32 %v1329_v26, %v606_v56 }
 0x1dd   :  { %v601_v25 = vpop.f32.mrf.mxu0 }
 0x1de   :  { %v602_v37 = vadd.f32 %v1329_v26, %v601_v25 }
 0x1df   :  { %v608_v61 = vpop.f32.mrf.mxu2 }
 0x1e0   :  { %v609_v33 = vadd.f32 %v1329_v26, %v608_v61 }
 0x1e2   :  { %v638_v39 = vpack.c.bf16 %v609_v33, %v607_v36 }
 0x1e5   :  { %v603_v35 = vpop.f32.mrf.mxu0 }
 0x1e6   :  { %v604_v38 = vadd.f32 %v1329_v26, %v603_v35 }
 0x1e7   :  { %v611_v62 = vpop.f32.mrf.mxu2 }
 0x1e8   :  { %v612_v32 = vadd.f32 %v1329_v26, %v611_v62  ;;  %v637_v42 = vpack.c.bf16 %v604_v38, %v602_v37  ;;  %v1330_v37 = vld [vmem:[%s1708_s7] ss:$0 sm:$0xff] }
 0x1ef   :  { %v613_v63 = vpop.f32.mrf.mxu2 }
 0x1f0   :  { %v614_v30 = vadd.f32 %v1329_v26, %v613_v63 }
 0x1f2   :  { %v639_v34 = vpack.c.bf16 %v614_v30, %v612_v32 }
 0x1f7   :  { %v616_v0 = vpop.f32.mrf.mxu2 }
 0x1f8   :  { %v617_v29 = vadd.f32 %v1329_v26, %v616_v0 }
 0x1ff   :  { %v618_v1 = vpop.f32.mrf.mxu2 }
 0x200   :  { %v619_v27 = vadd.f32 %v1329_v26, %v618_v1 }
 0x202   :  { %v640_v31 = vpack.c.bf16 %v619_v27, %v617_v29 }
 0x207   :  { %v621_v2 = vpop.f32.mrf.mxu2 }
 0x208   :  { %v622_v24 = vadd.f32 %v1329_v26, %v621_v2 }
 0x20f   :  { %v623_v3 = vpop.f32.mrf.mxu2 }
 0x210   :  { %v624_v22 = vadd.f32 %v1329_v26, %v623_v3 }
 0x212   :  { %v641_v28 = vpack.c.bf16 %v624_v22, %v622_v24 }
 0x217   :  { %v626_v4 = vpop.f32.mrf.mxu2 }
 0x218   :  { %v627_v21 = vadd.f32 %v1329_v26, %v626_v4 }
 0x21f   :  { %v628_v5 = vpop.f32.mrf.mxu2 }
 0x220   :  { %v629_v17 = vadd.f32 %v1329_v26, %v628_v5 }
 0x222   :  { %v642_v23 = vpack.c.bf16 %v629_v17, %v627_v21 }
 0x227   :  { %v631_v6 = vpop.f32.mrf.mxu2 }
 0x228   :  { %v632_v15 = vadd.f32 %v1329_v26, %v631_v6 }
 0x22f   :  { %v633_v14 = vpop.f32.mrf.mxu2 }
 0x230   :  { %v634_v16 = vadd.f32 %v1329_v26, %v633_v14 }
 0x232   :  { %v643_v19 = vpack.c.bf16 %v634_v16, %v632_v15 }
 0x234   :  { %644 = vmatpush.bf16.msrb.mxu3 %v643_v19 }
 0x238   :  { %645 = vmatpush.bf16.msrb.mxu3 %v642_v23 }
 0x23c   :  { %646 = vmatpush.bf16.msrb.mxu3 %v641_v28 }
 0x240   :  { %647 = vmatpush.bf16.msrb.mxu3 %v640_v31 }
 0x244   :  { %648 = vmatpush.bf16.msrb.mxu3 %v639_v34 }
 0x248   :  { %649 = vmatpush.bf16.msrb.mxu3 %v638_v39 }
 0x24c   :  { %650 = vmatpush.bf16.msrb.mxu3 %v637_v42 }
 0x250   :  { %651 = vmatpush.bf16.msrb.mxu3 %v636_v43 }
 0x253   :  { %652 = vmatmul.bf16.vlgmr.msrb.gmra.mxu3 %v1592_v11 }
 0x263   :  { %657 = vmatmul.bf16.gmra.mxu3 %v1598_v13 }
 0x273   :  { %662 = vmatmul.bf16.gmra.mxu3 %v1583_v8 }
 0x283   :  { %667 = vmatmul.bf16.gmra.mxu3 %v1586_v9 }
 0x293   :  { %672 = vmatmul.bf16.gmra.mxu3 %v1589_v10 }
 0x2a3   :  { %677 = vmatmul.bf16.gmra.mxu3 %v1595_v12 }
 0x2b3   :  { %682 = vmatmul.bf16.gmra.mxu3 %v1601_v18 }
 0x2c3   :  { %687 = vmatmul.bf16.gmra.mxu3 %v1604_v20 }
 0x2d6   :  { %v653_v52 = vpop.f32.mrf.mxu3 }
 0x2d7   :  { %v693_v54 = vmax.f32 %v653_v52, 0.0 }
 0x2de   :  { %v655_v53 = vpop.f32.mrf.mxu3 }
 0x2df   :  { %v694_v57 = vmax.f32 %v655_v53, 0.0 }
 0x2e1   :  { %v726_v58 = vpack.c.bf16 %v694_v57, %v693_v54 }
 0x2e3   :  { %793 = vmatmul.bf16.vlgmr.msrb.gmra.mxu0 %v726_v58 }
 0x2e6   :  { %v658_v59 = vpop.f32.mrf.mxu3 }
 0x2e7   :  { %v695_v56 = vmax.f32 %v658_v59, 0.0 }
 0x2ee   :  { %v660_v60 = vpop.f32.mrf.mxu3 }
 0x2ef   :  { %v696_v61 = vmax.f32 %v660_v60, 0.0 }
 0x2f1   :  { %v727_v62 = vpack.c.bf16 %v696_v61, %v695_v56 }
 0x2f3   :  { %798 = vmatmul.bf16.gmra.mxu0 %v727_v62 }
 0x2f6   :  { %v663_v63 = vpop.f32.mrf.mxu3 }
 0x2f7   :  { %v697_v1 = vmax.f32 %v663_v63, 0.0 }
 0x2fe   :  { %v665_v0 = vpop.f32.mrf.mxu3 }
 0x2ff   :  { %v698_v2 = vmax.f32 %v665_v0, 0.0 }
 0x301   :  { %v728_v3 = vpack.c.bf16 %v698_v2, %v697_v1 }
 0x303   :  { %803 = vmatmul.bf16.gmra.mxu0 %v728_v3 }
 0x306   :  { %v668_v4 = vpop.f32.mrf.mxu3 }
 0x307   :  { %v699_v55 = vmax.f32 %v668_v4, 0.0 }
 0x30e   :  { %v670_v5 = vpop.f32.mrf.mxu3 }
 0x30f   :  { %v700_v6 = vmax.f32 %v670_v5, 0.0 }
 0x311   :  { %v729_v26 = vpack.c.bf16 %v700_v6, %v699_v55 }
 0x313   :  { %808 = vmatmul.bf16.gmra.mxu0 %v729_v26 }
 0x316   :  { %v673_v7 = vpop.f32.mrf.mxu3 }
 0x317   :  { %v701_v15 = vmax.f32 %v673_v7, 0.0 }
 0x31e   :  { %v675_v14 = vpop.f32.mrf.mxu3 }
 0x31f   :  { %v702_v16 = vmax.f32 %v675_v14, 0.0 }
 0x321   :  { %v730_v17 = vpack.c.bf16 %v702_v16, %v701_v15 }
 0x323   :  { %813 = vmatmul.bf16.gmra.mxu0 %v730_v17 }
 0x326   :  { %v678_v19 = vpop.f32.mrf.mxu3 }
 0x327   :  { %v703_v22 = vmax.f32 %v678_v19, 0.0  ;;  %v1295_v19 = vld [vmem:[#allocation10 + $0x38] sm:$0xff] }
 0x328   :  { %983 = vmatpush.bf16.msrb.mxu2 %v1295_v19 }
 0x32e   :  { %v680_v21 = vpop.f32.mrf.mxu3 }
 0x32f   :  { %v704_v23 = vmax.f32 %v680_v21, 0.0  ;;  %v1294_v21 = vld [vmem:[#allocation10 + $0x30] sm:$0xff] }
 0x330   :  { %984 = vmatpush.bf16.msrb.mxu2 %v1294_v21 }
 0x331   :  { %v731_v24 = vpack.c.bf16 %v704_v23, %v703_v22  ;;  %v1293_v22 = vld [vmem:[#allocation10 + $0x28] sm:$0xff]  ;;  %v1292_v23 = vld [vmem:[#allocation10 + $0x20] sm:$0xff] }
 0x333   :  { %818 = vmatmul.bf16.gmra.mxu0 %v731_v24  ;;  %v1291_v24 = vld [vmem:[#allocation10 + $0x18] sm:$0xff] }
 0x334   :  { %985 = vmatpush.bf16.msrb.mxu2 %v1293_v22 }
 0x336   :  { %v683_v25 = vpop.f32.mrf.mxu3 }
 0x337   :  { %v705_v28 = vmax.f32 %v683_v25, 0.0 }
 0x338   :  { %986 = vmatpush.bf16.msrb.mxu2 %v1292_v23 }
 0x33c   :  { %987 = vmatpush.bf16.msrb.mxu2 %v1291_v24 }
 0x33e   :  { %v685_v27 = vpop.f32.mrf.mxu3 }
 0x33f   :  { %v706_v29 = vmax.f32 %v685_v27, 0.0 }
 0x341   :  { %v732_v30 = vpack.c.bf16 %v706_v29, %v705_v28 }
 0x343   :  { %823 = vmatmul.bf16.gmra.mxu0 %v732_v30 }
 0x346   :  { %v688_v31 = vpop.f32.mrf.mxu3 }
 0x347   :  { %v707_v33 = vmax.f32 %v688_v31, 0.0 }
 0x34e   :  { %v690_v32 = vpop.f32.mrf.mxu3 }
 0x34f   :  { %v708_v34 = vmax.f32 %v690_v32, 0.0 }
 0x351   :  { %v733_v35 = vpack.c.bf16 %v708_v34, %v707_v33 }
 0x353   :  { %828 = vmatmul.bf16.gmra.mxu0 %v733_v35 }
 0x360   :  { %v794_v36 = vpop.f32.mrf.mxu0 }
 0x361   :  { %v795_v39 = vadd.f32 %v1330_v37, %v794_v36 }
 0x368   :  { %v796_v38 = vpop.f32.mrf.mxu0 }
 0x369   :  { %v797_v40 = vadd.f32 %v1330_v37, %v796_v38 }
 0x36b   :  { %v834_v41 = vpack.c.bf16 %v797_v40, %v795_v39 }
 0x370   :  { %v799_v42 = vpop.f32.mrf.mxu0 }
 0x371   :  { %v800_v44 = vadd.f32 %v1330_v37, %v799_v42 }
 0x378   :  { %v801_v43 = vpop.f32.mrf.mxu0 }
 0x379   :  { %v802_v45 = vadd.f32 %v1330_v37, %v801_v43 }
 0x37b   :  { %v835_v46 = vpack.c.bf16 %v802_v45, %v800_v44 }
 0x380   :  { %v804_v47 = vpop.f32.mrf.mxu0 }
 0x381   :  { %v805_v49 = vadd.f32 %v1330_v37, %v804_v47 }
 0x388   :  { %v806_v48 = vpop.f32.mrf.mxu0 }
 0x389   :  { %v807_v50 = vadd.f32 %v1330_v37, %v806_v48 }
 0x38b   :  { %v836_v51 = vpack.c.bf16 %v807_v50, %v805_v49 }
 0x390   :  { %v809_v52 = vpop.f32.mrf.mxu0 }
 0x391   :  { %v810_v54 = vadd.f32 %v1330_v37, %v809_v52 }
 0x398   :  { %v811_v53 = vpop.f32.mrf.mxu0 }
 0x399   :  { %v812_v57 = vadd.f32 %v1330_v37, %v811_v53 }
 0x39b   :  { %v837_v58 = vpack.c.bf16 %v812_v57, %v810_v54 }
 0x3a0   :  { %v814_v59 = vpop.f32.mrf.mxu0 }
 0x3a1   :  { %v815_v16 = vadd.f32 %v1330_v37, %v814_v59 }
 0x3a8   :  { %v816_v60 = vpop.f32.mrf.mxu0 }
 0x3a9   :  { %v817_v14 = vadd.f32 %v1330_v37, %v816_v60 }
 0x3ab   :  { %v838_v17 = vpack.c.bf16 %v817_v14, %v815_v16 }
 0x3b0   :  { %v819_v56 = vpop.f32.mrf.mxu0 }
 0x3b1   :  { %v820_v7 = vadd.f32 %v1330_v37, %v819_v56 }
 0x3b8   :  { %v821_v61 = vpop.f32.mrf.mxu0 }
 0x3b9   :  { %v822_v6 = vadd.f32 %v1330_v37, %v821_v61 }
 0x3bb   :  { %v839_v15 = vpack.c.bf16 %v822_v6, %v820_v7 }
 0x3c0   :  { %v824_v62 = vpop.f32.mrf.mxu0 }
 0x3c1   :  { %v825_v55 = vadd.f32 %v1330_v37, %v824_v62  ;;  %v1331_v62 = vld [vmem:[%s1710_s9] ss:$0 sm:$0xff] }
 0x3c8   :  { %v826_v63 = vpop.f32.mrf.mxu0 }
 0x3c9   :  { %v827_v4 = vadd.f32 %v1330_v37, %v826_v63 }
 0x3cb   :  { %v840_v26 = vpack.c.bf16 %v827_v4, %v825_v55 }
 0x3d0   :  { %v829_v0 = vpop.f32.mrf.mxu0 }
 0x3d1   :  { %v830_v2 = vadd.f32 %v1330_v37, %v829_v0 }
 0x3d8   :  { %v831_v1 = vpop.f32.mrf.mxu0 }
 0x3d9   :  { %v832_v3 = vadd.f32 %v1330_v37, %v831_v1 }
 0x3db   :  { %v841_v5 = vpack.c.bf16 %v832_v3, %v830_v2 }
 0x3dd   :  { %842 = vmatpush.bf16.msrb.mxu1 %v841_v5 }
 0x3e1   :  { %843 = vmatpush.bf16.msrb.mxu1 %v840_v26 }
 0x3e5   :  { %844 = vmatpush.bf16.msrb.mxu1 %v839_v15 }
 0x3e9   :  { %845 = vmatpush.bf16.msrb.mxu1 %v838_v17 }
 0x3ed   :  { %846 = vmatpush.bf16.msrb.mxu1 %v837_v58 }
 0x3f1   :  { %847 = vmatpush.bf16.msrb.mxu1 %v836_v51 }
 0x3f5   :  { %848 = vmatpush.bf16.msrb.mxu1 %v835_v46 }
 0x3f9   :  { %849 = vmatpush.bf16.msrb.mxu1 %v834_v41 }
 0x3fc   :  { %850 = vmatmul.bf16.vlgmr.msrb.gmra.mxu1 %v1592_v11  ;;  %v1290_v11 = vld [vmem:[#allocation10 + $0x10] sm:$0xff] }
 0x3fd   :  { %988 = vmatpush.bf16.msrb.mxu2 %v1290_v11 }
 0x40c   :  { %855 = vmatmul.bf16.gmra.mxu1 %v1598_v13  ;;  %v1289_v13 = vld [vmem:[#allocation10 + $0x8] sm:$0xff] }
 0x40d   :  { %989 = vmatpush.bf16.msrb.mxu2 %v1289_v13 }
 0x41c   :  { %860 = vmatmul.bf16.gmra.mxu1 %v1583_v8  ;;  %v1288_v8 = vld [vmem:[#allocation10] sm:$0xff] }
 0x41d   :  { %990 = vmatpush.bf16.msrb.mxu2 %v1288_v8 }
 0x42c   :  { %865 = vmatmul.bf16.gmra.mxu1 %v1586_v9 }
 0x43c   :  { %870 = vmatmul.bf16.gmra.mxu1 %v1589_v10 }
 0x44c   :  { %875 = vmatmul.bf16.gmra.mxu1 %v1595_v12 }
 0x45c   :  { %880 = vmatmul.bf16.gmra.mxu1 %v1601_v18 }
 0x46c   :  { %885 = vmatmul.bf16.gmra.mxu1 %v1604_v20 }
 0x479   :  { %v851_v9 = vpop.f32.mrf.mxu1 }
 0x47a   :  { %v891_v27 = vmax.f32 %v851_v9, 0.0 }
 0x481   :  { %v853_v25 = vpop.f32.mrf.mxu1 }
 0x482   :  { %v892_v28 = vmax.f32 %v853_v25, 0.0 }
 0x484   :  { %v907_v29 = vpack.c.bf16 %v892_v28, %v891_v27 }
 0x486   :  { %991 = vmatmul.bf16.vlgmr.msrb.gmra.mxu2 %v907_v29 }
 0x489   :  { %v856_v10 = vpop.f32.mrf.mxu1 }
 0x48a   :  { %v893_v31 = vmax.f32 %v856_v10, 0.0 }
 0x491   :  { %v858_v30 = vpop.f32.mrf.mxu1 }
 0x492   :  { %v894_v12 = vmax.f32 %v858_v30, 0.0 }
 0x494   :  { %v908_v32 = vpack.c.bf16 %v894_v12, %v893_v31 }
 0x496   :  { %996 = vmatmul.bf16.gmra.mxu2 %v908_v32 }
 0x499   :  { %v861_v33 = vpop.f32.mrf.mxu1 }
 0x49a   :  { %v895_v18 = vmax.f32 %v861_v33, 0.0 }
 0x4a1   :  { %v863_v34 = vpop.f32.mrf.mxu1 }
 0x4a2   :  { %v896_v35 = vmax.f32 %v863_v34, 0.0 }
 0x4a4   :  { %v909_v36 = vpack.c.bf16 %v896_v35, %v895_v18 }
 0x4a6   :  { %1001 = vmatmul.bf16.gmra.mxu2 %v909_v36 }
 0x4a9   :  { %v866_v37 = vpop.f32.mrf.mxu1 }
 0x4aa   :  { %v897_v38 = vmax.f32 %v866_v37, 0.0 }
 0x4b1   :  { %v868_v20 = vpop.f32.mrf.mxu1 }
 0x4b2   :  { %v898_v39 = vmax.f32 %v868_v20, 0.0 }
 0x4b4   :  { %v910_v40 = vpack.c.bf16 %v898_v39, %v897_v38 }
 0x4b6   :  { %1006 = vmatmul.bf16.gmra.mxu2 %v910_v40 }
 0x4b9   :  { %v871_v41 = vpop.f32.mrf.mxu1 }
 0x4ba   :  { %v899_v43 = vmax.f32 %v871_v41, 0.0 }
 0x4c1   :  { %v873_v42 = vpop.f32.mrf.mxu1 }
 0x4c2   :  { %v900_v44 = vmax.f32 %v873_v42, 0.0 }
 0x4c4   :  { %v911_v45 = vpack.c.bf16 %v900_v44, %v899_v43 }
 0x4c6   :  { %1011 = vmatmul.bf16.gmra.mxu2 %v911_v45 }
 0x4c9   :  { %v876_v46 = vpop.f32.mrf.mxu1 }
 0x4ca   :  { %v901_v48 = vmax.f32 %v876_v46, 0.0 }
 0x4d1   :  { %v878_v47 = vpop.f32.mrf.mxu1 }
 0x4d2   :  { %v902_v49 = vmax.f32 %v878_v47, 0.0 }
 0x4d4   :  { %v912_v50 = vpack.c.bf16 %v902_v49, %v901_v48 }
 0x4d6   :  { %1016 = vmatmul.bf16.gmra.mxu2 %v912_v50 }
 0x4d9   :  { %v881_v51 = vpop.f32.mrf.mxu1 }
 0x4da   :  { %v903_v53 = vmax.f32 %v881_v51, 0.0 }
 0x4e1   :  { %v883_v52 = vpop.f32.mrf.mxu1 }
 0x4e2   :  { %v904_v54 = vmax.f32 %v883_v52, 0.0 }
 0x4e4   :  { %v913_v57 = vpack.c.bf16 %v904_v54, %v903_v53 }
 0x4e6   :  { %1021 = vmatmul.bf16.gmra.mxu2 %v913_v57 }
 0x4e9   :  { %v886_v58 = vpop.f32.mrf.mxu1 }
 0x4ea   :  { %v905_v60 = vmax.f32 %v886_v58, 0.0 }
 0x4f1   :  { %v888_v59 = vpop.f32.mrf.mxu1 }
 0x4f2   :  { %v906_v56 = vmax.f32 %v888_v59, 0.0 }
 0x4f4   :  { %v914_v61 = vpack.c.bf16 %v906_v56, %v905_v60 }
 0x4f6   :  { %1026 = vmatmul.bf16.gmra.mxu2 %v914_v61 }
 0x509   :  { %v992_v63 = vpop.f32.mrf.mxu2 }
 0x50a   :  { %v993_v0 = vadd.f32 %v1331_v62, %v992_v63 }
 0x50c   :  { %1032 = vst [vmem:[%s1711_s10] sm:$0xff] %v993_v0 }
 0x511   :  { %v994_v1 = vpop.f32.mrf.mxu2 }
 0x512   :  { %v995_v2 = vadd.f32 %v1331_v62, %v994_v1 }
 0x514   :  { %1033 = vst [vmem:[%s1711_s10 + $0x8] sm:$0xff] %v995_v2 }
 0x519   :  { %v997_v3 = vpop.f32.mrf.mxu2 }
 0x51a   :  { %v998_v4 = vadd.f32 %v1331_v62, %v997_v3 }
 0x51c   :  { %1034 = vst [vmem:[%s1711_s10 + $0x10] sm:$0xff] %v998_v4 }
 0x521   :  { %v999_v5 = vpop.f32.mrf.mxu2 }
 0x522   :  { %v1000_v55 = vadd.f32 %v1331_v62, %v999_v5 }
 0x524   :  { %1035 = vst [vmem:[%s1711_s10 + $0x18] sm:$0xff] %v1000_v55 }
 0x529   :  { %v1002_v6 = vpop.f32.mrf.mxu2 }
 0x52a   :  { %v1003_v26 = vadd.f32 %v1331_v62, %v1002_v6 }
 0x52c   :  { %1036 = vst [vmem:[%s1711_s10 + $0x20] sm:$0xff] %v1003_v26 }
 0x531   :  { %v1004_v7 = vpop.f32.mrf.mxu2 }
 0x532   :  { %v1005_v14 = vadd.f32 %v1331_v62, %v1004_v7 }
 0x534   :  { %1037 = vst [vmem:[%s1711_s10 + $0x28] sm:$0xff] %v1005_v14 }
 0x539   :  { %v1007_v15 = vpop.f32.mrf.mxu2 }
 0x53a   :  { %v1008_v16 = vadd.f32 %v1331_v62, %v1007_v15 }
 0x53c   :  { %1038 = vst [vmem:[%s1711_s10 + $0x30] sm:$0xff] %v1008_v16 }
 0x541   :  { %v1009_v17 = vpop.f32.mrf.mxu2 }
 0x542   :  { %v1010_v19 = vadd.f32 %v1331_v62, %v1009_v17 }
 0x544   :  { %1039 = vst [vmem:[%s1711_s10 + $0x38] sm:$0xff] %v1010_v19 }
 0x549   :  { %v1012_v21 = vpop.f32.mrf.mxu2 }
 0x54a   :  { %v1013_v22 = vadd.f32 %v1331_v62, %v1012_v21 }
 0x54c   :  { %1040 = vst [vmem:[%s1711_s10 + $0x40] sm:$0xff] %v1013_v22 }
 0x551   :  { %v1014_v23 = vpop.f32.mrf.mxu2 }
 0x552   :  { %v1015_v24 = vadd.f32 %v1331_v62, %v1014_v23 }
 0x554   :  { %1041 = vst [vmem:[%s1711_s10 + $0x48] sm:$0xff] %v1015_v24 }
 0x559   :  { %v1017_v11 = vpop.f32.mrf.mxu2 }
 0x55a   :  { %v1018_v13 = vadd.f32 %v1331_v62, %v1017_v11 }
 0x55c   :  { %1042 = vst [vmem:[%s1711_s10 + $0x50] sm:$0xff] %v1018_v13 }
 0x561   :  { %v1019_v8 = vpop.f32.mrf.mxu2 }
 0x562   :  { %v1020_v9 = vadd.f32 %v1331_v62, %v1019_v8 }
 0x564   :  { %1043 = vst [vmem:[%s1711_s10 + $0x58] sm:$0xff] %v1020_v9 }
 0x569   :  { %v1022_v25 = vpop.f32.mrf.mxu2 }
 0x56a   :  { %v1023_v27 = vadd.f32 %v1331_v62, %v1022_v25 }
 0x56c   :  { %1044 = vst [vmem:[%s1711_s10 + $0x60] sm:$0xff] %v1023_v27 }
 0x571   :  { %v1024_v28 = vpop.f32.mrf.mxu2 }
 0x572   :  { %v1025_v29 = vadd.f32 %v1331_v62, %v1024_v28 }
 0x574   :  { %1045 = vst [vmem:[%s1711_s10 + $0x68] sm:$0xff] %v1025_v29 }
 0x579   :  { %v1027_v10 = vpop.f32.mrf.mxu2 }
 0x57a   :  { %v1028_v30 = vadd.f32 %v1331_v62, %v1027_v10 }
 0x57c   :  { %1046 = vst [vmem:[%s1711_s10 + $0x70] sm:$0xff] %v1028_v30 }
 0x581   :  { %v1029_v31 = vpop.f32.mrf.mxu2 }
 0x582   :  { %v1030_v12 = vadd.f32 %v1331_v62, %v1029_v31 }
 0x584   :  { %1047 = vst [vmem:[%s1711_s10 + $0x78] sm:$0xff] %v1030_v12 }
 0x585   :  { %1052 = vsyncpa [#allocation3], 1 }
 0x586   :  { %1053 = vsyncpa [#allocation5], 1 }
 0x587   :  { %1054 = vsyncpa [#allocation8], 1 }
 0x588   :  { %1055 = vsyncpa [#allocation11], 1 }

</bundles_post_ra>
